<compile_context>
chip_gen: v6e
topology: v6e:2x2x1
jax: 0.10.0
libtpu: 0.0.40
codegen_flags: <defaults>
</compile_context>

<pallas_src>
import functools

import jax
import jax.numpy as jnp
from jax import lax
from jax.experimental import pallas as pl
from jax.experimental.pallas import tpu as pltpu


def _sinusoidal_table(time_step: int, dim: int) -> jnp.ndarray:
    """Reproduce the PyTorch table construction exactly (exp(+arange/dim*log(1e4)))."""
    pos = jnp.arange(time_step, dtype=jnp.float32)                      # [T]
    log_emb = jnp.arange(0, dim, 2, dtype=jnp.float32) / dim * jnp.log(10000.0)
    emb = jnp.exp(log_emb)[None, :] * pos[:, None]                      # [T, dim//2]
    return jnp.concatenate([jnp.sin(emb), jnp.cos(emb)], axis=-1)       # [T, dim]


def fold_table_and_first_linear(table, w1, b1):
    """h0[t] = table[t] @ w1 + b1, computed once (table is frozen)."""
    return jnp.dot(table, w1, precision=lax.Precision.HIGHEST) + b1[None, :]


def _time_emb_kernel(x_ref, h0_ref, w2_ref, b2_ref, o_ref, e_ref, *, batch):
    # x_ref : SMEM [B]       int32 time indices (scalar-prefetched)
    # h0_ref: VMEM [T, H]    folded table (table @ w1 + b1)
    # w2_ref: VMEM [H, H]
    # b2_ref: VMEM [1, H]
    # o_ref : VMEM [B, H]
    # e_ref : VMEM scratch [B, H]
    # In-kernel gather of B rows (B is tiny -> static unrolled loop).
    for i in range(batch):
        idx = x_ref[i]
        e_ref[pl.ds(i, 1), :] = h0_ref[pl.ds(idx, 1), :]
    h = e_ref[...]
    h = h * jax.nn.sigmoid(h)                                           # SiLU
    o_ref[...] = (
        jnp.dot(h, w2_ref[...], preferred_element_type=jnp.float32) + b2_ref[...]
    )


def time_embedding_forward(x, h0, w2, b2):
    """x: [B] int32 time indices; h0: [T, H] folded table. Returns [B, H] f32."""
    B = x.shape[0]
    T, H = h0.shape
    b2_2d = b2.reshape(1, H)

    cost = pl.CostEstimate(
        flops=2 * B * H * H + 4 * B * H,        # second matmul + bias + SiLU muls
        transcendentals=B * H,                  # sigmoid
        bytes_accessed=4 * (T * H + H * H + H + B * H) + 4 * B,
    )

    grid_spec = pltpu.PrefetchScalarGridSpec(
        num_scalar_prefetch=1,                  # x -> SMEM, passed to index_maps
        grid=(1,),
        in_specs=[
            pl.BlockSpec((T, H), lambda i, x_s: (0, 0)),   # whole folded table in VMEM
            pl.BlockSpec((H, H), lambda i, x_s: (0, 0)),   # w2
            pl.BlockSpec((1, H), lambda i, x_s: (0, 0)),   # b2
        ],
        out_specs=pl.BlockSpec((B, H), lambda i, x_s: (0, 0)),
        scratch_shapes=[pltpu.VMEM((B, H), jnp.float32)],
    )

    return pl.pallas_call(
        functools.partial(_time_emb_kernel, batch=B),
        out_shape=jax.ShapeDtypeStruct((B, H), jnp.float32),
        grid_spec=grid_spec,
        compiler_params=pltpu.CompilerParams(dimension_semantics=("arbitrary",)),
        cost_estimate=cost,
    )(x, h0, w2, b2_2d)


def _reference(x, table, w1, b1, w2, b2):
    emb = jnp.take(table, x, axis=0)
    h = jnp.dot(emb, w1, precision=lax.Precision.HIGHEST) + b1
    h = h * jax.nn.sigmoid(h)
    return jnp.dot(h, w2, precision=lax.Precision.HIGHEST) + b2


if __name__ == "__main__":
    # Small shapes consistent with the module: time_step=100, dim=32 -> hidden=128.
    TIME_STEP = 100
    DIM = 32
    HIDDEN = 4 * DIM
    BATCH = 8

    key = jax.random.PRNGKey(0)
    k1, k2, k3, k4, kx = jax.random.split(key, 5)

    table = _sinusoidal_table(TIME_STEP, DIM)                           # frozen embedding

    # Deterministic synthetic parameters, stored as [in, out] for y = x @ W + b.
    w1 = jax.random.normal(k1, (DIM, HIDDEN), jnp.float32) * (1.0 / jnp.sqrt(DIM))
    b1 = jax.random.normal(k2, (HIDDEN,), jnp.float32) * 0.01
    w2 = jax.random.normal(k3, (HIDDEN, HIDDEN), jnp.float32) * (1.0 / jnp.sqrt(HIDDEN))
    b2 = jax.random.normal(k4, (HIDDEN,), jnp.float32) * 0.01

    # Integer time indices in [0, TIME_STEP). (NB: like jnp.take, the in-kernel
    # gather does not range-check; indices are assumed valid, as in training.)
    x = jax.random.randint(kx, (BATCH,), 0, TIME_STEP, dtype=jnp.int32)

    # One-time fold of the frozen table with the first Linear ([T, HIDDEN]).
    h0 = fold_table_and_first_linear(table, w1, b1)

    out = time_embedding_forward(x, h0, w2, b2)
    out = jax.block_until_ready(out)

    ref = _reference(x, table, w1, b1, w2, b2)
    assert out.shape == (BATCH, HIDDEN)
    assert jnp.allclose(out, ref, atol=1e-4, rtol=1e-4), "mismatch vs reference"

    print("KERNEL_OK")
</pallas_src>

<mosaic_0001>
module attributes {stable_mosaic.version = 11 : i64} {
  func.func @_time_emb_kernel(%arg0: i32, %arg1: memref<8xi32, #tpu.memory_space<smem>>, %arg2: memref<100x128xf32, #tpu.memory_space<vmem>>, %arg3: memref<128x128xf32, #tpu.memory_space<vmem>>, %arg4: memref<1x128xf32, #tpu.memory_space<vmem>>, %arg5: memref<8x128xf32, #tpu.memory_space<vmem>>, %arg6: memref<8x128xf32, #tpu.memory_space<vmem>>) attributes {dimension_semantics = [#tpu.dimension_semantics<arbitrary>], iteration_bounds = array<i64: 1>, scalar_prefetch = 1 : i64, scratch_operands = 1 : i64, tpu.core_type = #tpu.core_type<tc>, window_params = [{pipeline_mode = #tpu.pipeline_mode<synchronous>, transform_indices = @transform_0, window_bounds = array<i64: 100, 128>}, {pipeline_mode = #tpu.pipeline_mode<synchronous>, transform_indices = @transform_1, window_bounds = array<i64: 128, 128>}, {pipeline_mode = #tpu.pipeline_mode<synchronous>, transform_indices = @transform_2, window_bounds = array<i64: 1, 128>}, {pipeline_mode = #tpu.pipeline_mode<synchronous>, transform_indices = @transform_3, window_bounds = array<i64: 8, 128>}]} {
    %c0 = arith.constant 0 : index
    %0 = memref.load %arg1[%c0] : memref<8xi32, #tpu.memory_space<smem>>
    %1 = arith.index_cast %0 : i32 to index
    %c0_0 = arith.constant 0 : index
    %2 = vector.load %arg2[%1, %c0_0] : memref<100x128xf32, #tpu.memory_space<vmem>>, vector<1x128xf32>
    %c0_1 = arith.constant 0 : index
    %c0_2 = arith.constant 0 : index
    %3 = vector.load %arg6[%c0_1, %c0_2] : memref<8x128xf32, #tpu.memory_space<vmem>>, vector<1x128xf32>
    tpu.vector_store %arg6[%c0_1, %c0_2], %2 {strides = array<i32>} : memref<8x128xf32, #tpu.memory_space<vmem>>, vector<1x128xf32>,
    %c1 = arith.constant 1 : index
    %4 = memref.load %arg1[%c1] : memref<8xi32, #tpu.memory_space<smem>>
    %5 = arith.index_cast %4 : i32 to index
    %c0_3 = arith.constant 0 : index
    %6 = vector.load %arg2[%5, %c0_3] : memref<100x128xf32, #tpu.memory_space<vmem>>, vector<1x128xf32>
    %c1_4 = arith.constant 1 : index
    %c0_5 = arith.constant 0 : index
    %7 = vector.load %arg6[%c1_4, %c0_5] : memref<8x128xf32, #tpu.memory_space<vmem>>, vector<1x128xf32>
    tpu.vector_store %arg6[%c1_4, %c0_5], %6 {strides = array<i32>} : memref<8x128xf32, #tpu.memory_space<vmem>>, vector<1x128xf32>,
    %c2 = arith.constant 2 : index
    %8 = memref.load %arg1[%c2] : memref<8xi32, #tpu.memory_space<smem>>
    %9 = arith.index_cast %8 : i32 to index
    %c0_6 = arith.constant 0 : index
    %10 = vector.load %arg2[%9, %c0_6] : memref<100x128xf32, #tpu.memory_space<vmem>>, vector<1x128xf32>
    %c2_7 = arith.constant 2 : index
    %c0_8 = arith.constant 0 : index
    %11 = vector.load %arg6[%c2_7, %c0_8] : memref<8x128xf32, #tpu.memory_space<vmem>>, vector<1x128xf32>
    tpu.vector_store %arg6[%c2_7, %c0_8], %10 {strides = array<i32>} : memref<8x128xf32, #tpu.memory_space<vmem>>, vector<1x128xf32>,
    %c3 = arith.constant 3 : index
    %12 = memref.load %arg1[%c3] : memref<8xi32, #tpu.memory_space<smem>>
    %13 = arith.index_cast %12 : i32 to index
    %c0_9 = arith.constant 0 : index
    %14 = vector.load %arg2[%13, %c0_9] : memref<100x128xf32, #tpu.memory_space<vmem>>, vector<1x128xf32>
    %c3_10 = arith.constant 3 : index
    %c0_11 = arith.constant 0 : index
    %15 = vector.load %arg6[%c3_10, %c0_11] : memref<8x128xf32, #tpu.memory_space<vmem>>, vector<1x128xf32>
    tpu.vector_store %arg6[%c3_10, %c0_11], %14 {strides = array<i32>} : memref<8x128xf32, #tpu.memory_space<vmem>>, vector<1x128xf32>,
    %c4 = arith.constant 4 : index
    %16 = memref.load %arg1[%c4] : memref<8xi32, #tpu.memory_space<smem>>
    %17 = arith.index_cast %16 : i32 to index
    %c0_12 = arith.constant 0 : index
    %18 = vector.load %arg2[%17, %c0_12] : memref<100x128xf32, #tpu.memory_space<vmem>>, vector<1x128xf32>
    %c4_13 = arith.constant 4 : index
    %c0_14 = arith.constant 0 : index
    %19 = vector.load %arg6[%c4_13, %c0_14] : memref<8x128xf32, #tpu.memory_space<vmem>>, vector<1x128xf32>
    tpu.vector_store %arg6[%c4_13, %c0_14], %18 {strides = array<i32>} : memref<8x128xf32, #tpu.memory_space<vmem>>, vector<1x128xf32>,
    %c5 = arith.constant 5 : index
    %20 = memref.load %arg1[%c5] : memref<8xi32, #tpu.memory_space<smem>>
    %21 = arith.index_cast %20 : i32 to index
    %c0_15 = arith.constant 0 : index
    %22 = vector.load %arg2[%21, %c0_15] : memref<100x128xf32, #tpu.memory_space<vmem>>, vector<1x128xf32>
    %c5_16 = arith.constant 5 : index
    %c0_17 = arith.constant 0 : index
    %23 = vector.load %arg6[%c5_16, %c0_17] : memref<8x128xf32, #tpu.memory_space<vmem>>, vector<1x128xf32>
    tpu.vector_store %arg6[%c5_16, %c0_17], %22 {strides = array<i32>} : memref<8x128xf32, #tpu.memory_space<vmem>>, vector<1x128xf32>,
    %c6 = arith.constant 6 : index
    %24 = memref.load %arg1[%c6] : memref<8xi32, #tpu.memory_space<smem>>
    %25 = arith.index_cast %24 : i32 to index
    %c0_18 = arith.constant 0 : index
    %26 = vector.load %arg2[%25, %c0_18] : memref<100x128xf32, #tpu.memory_space<vmem>>, vector<1x128xf32>
    %c6_19 = arith.constant 6 : index
    %c0_20 = arith.constant 0 : index
    %27 = vector.load %arg6[%c6_19, %c0_20] : memref<8x128xf32, #tpu.memory_space<vmem>>, vector<1x128xf32>
    tpu.vector_store %arg6[%c6_19, %c0_20], %26 {strides = array<i32>} : memref<8x128xf32, #tpu.memory_space<vmem>>, vector<1x128xf32>,
    %c7 = arith.constant 7 : index
    %28 = memref.load %arg1[%c7] : memref<8xi32, #tpu.memory_space<smem>>
    %29 = arith.index_cast %28 : i32 to index
    %c0_21 = arith.constant 0 : index
    %30 = vector.load %arg2[%29, %c0_21] : memref<100x128xf32, #tpu.memory_space<vmem>>, vector<1x128xf32>
    %c7_22 = arith.constant 7 : index
    %c0_23 = arith.constant 0 : index
    %31 = vector.load %arg6[%c7_22, %c0_23] : memref<8x128xf32, #tpu.memory_space<vmem>>, vector<1x128xf32>
    tpu.vector_store %arg6[%c7_22, %c0_23], %30 {strides = array<i32>} : memref<8x128xf32, #tpu.memory_space<vmem>>, vector<1x128xf32>,
    %c0_24 = arith.constant 0 : index
    %c0_25 = arith.constant 0 : index
    %32 = vector.load %arg6[%c0_24, %c0_25] : memref<8x128xf32, #tpu.memory_space<vmem>>, vector<8x128xf32>
    %33 = arith.negf %32 : vector<8x128xf32>
    %34 = math.exp %33 : vector<8x128xf32>
    %cst = arith.constant 1.000000e+00 : f32
    %35 = vector.broadcast %cst : f32 to vector<8x128xf32>
    %36 = arith.addf %35, %34 : vector<8x128xf32>
    %37 = arith.divf %35, %36 : vector<8x128xf32>
    %38 = arith.mulf %32, %37 : vector<8x128xf32>
    %c0_26 = arith.constant 0 : index
    %c0_27 = arith.constant 0 : index
    %39 = vector.load %arg3[%c0_26, %c0_27] : memref<128x128xf32, #tpu.memory_space<vmem>>, vector<128x128xf32>
    %cst_28 = arith.constant dense<0.000000e+00> : vector<8x128xf32>
    %40 = tpu.matmul %38, %39, %cst_28 {dimension_numbers = #tpu.dot_dimension_numbers<[1], [0], [0], [1], [0, 0, 1, 1], [], []>} : vector<8x128xf32>, vector<128x128xf32>, vector<8x128xf32> -> vector<8x128xf32>
    %c0_29 = arith.constant 0 : index
    %c0_30 = arith.constant 0 : index
    %41 = vector.load %arg4[%c0_29, %c0_30] : memref<1x128xf32, #tpu.memory_space<vmem>>, vector<1x128xf32>
    %42 = vector.broadcast %41 : vector<1x128xf32> to vector<8x128xf32>
    %43 = arith.addf %40, %42 : vector<8x128xf32>
    %c0_31 = arith.constant 0 : index
    %c0_32 = arith.constant 0 : index
    %44 = vector.load %arg5[%c0_31, %c0_32] : memref<8x128xf32, #tpu.memory_space<vmem>>, vector<8x128xf32>
    tpu.vector_store %arg5[%c0_31, %c0_32], %43 {strides = array<i32>} : memref<8x128xf32, #tpu.memory_space<vmem>>, vector<8x128xf32>,
    return
  }
  func.func @transform_0(%arg0: i32, %arg1: memref<8xi32, #tpu.memory_space<smem>>) -> (i32, i32) {
    %c0_i32 = arith.constant 0 : i32
    %c0_i32_0 = arith.constant 0 : i32
    %c0_i32_1 = arith.constant 0 : i32
    return %c0_i32, %c0_i32_0 : i32, i32
  }
  func.func @transform_1(%arg0: i32, %arg1: memref<8xi32, #tpu.memory_space<smem>>) -> (i32, i32) {
    %c0_i32 = arith.constant 0 : i32
    %c0_i32_0 = arith.constant 0 : i32
    %c0_i32_1 = arith.constant 0 : i32
    return %c0_i32, %c0_i32_0 : i32, i32
  }
  func.func @transform_2(%arg0: i32, %arg1: memref<8xi32, #tpu.memory_space<smem>>) -> (i32, i32) {
    %c0_i32 = arith.constant 0 : i32
    %c0_i32_0 = arith.constant 0 : i32
    %c0_i32_1 = arith.constant 0 : i32
    return %c0_i32, %c0_i32_0 : i32, i32
  }
  func.func @transform_3(%arg0: i32, %arg1: memref<8xi32, #tpu.memory_space<smem>>) -> (i32, i32) {
    %c0_i32 = arith.constant 0 : i32
    %c0_i32_0 = arith.constant 0 : i32
    %c0_i32_1 = arith.constant 0 : i32
    return %c0_i32, %c0_i32_0 : i32, i32
  }
}

</mosaic_0001>

<bundles_post_ra>
// kernel: tpu_custom_call.1
= control target key start
LH: loop header
LB: loop body
LE: loop exit
PB: predicated region body
PF: predicated region fallthrough
CT: control target
= control target key end

     0   :  { %s355_s15 = smov [#allocation4]   ;;  %s429_s0 = inlined_call_operand.hbm [shape: s32[8], index: 0, kind: input, shape index: {}]   ;;  %s430_s1 = inlined_call_operand.hbm [shape: f32[100,128], index: 1, kind: input, shape index: {}]   ;;  %s431_s2 = inlined_call_operand.hbm [shape: f32[128,128], index: 2, kind: input, shape index: {}]   ;;  %s432_s3 = inlined_call_operand.vmem [shape: f32[1,128], index: 3, kind: input, shape index: {}]   ;;  %s433_s4 = inlined_call_operand.hbm [shape: f32[8,128], index: 4, kind: output, shape index: {}]  }
   0x1   :  { %10 = dma.hbm_to_smem %s429_s0, 16, %s355_s15, [#allocation3] }
   0x2   :  { %347 = dma.done.wait [#allocation3], 16 }
   0x3   :  { %348 = vsyncadd [#allocation3], 4294967280 }
   0x4   :  { %12 = sfence }
   0x5   :  { %13 = vsyncpa [#allocation6], 0 }
   0x6   :  { %14 = vsyncpa [#allocation9], 0 }
   0x7   :  { %15 = vsyncpa [#allocation7], 0  ;;  %s356_s18 = smov [#allocation5]  }
   0x8   :  { %s21_s19 = sshll.u32 %s356_s18, 4  ;;  %s22_s19 = int_to_ptr.vmem [resolvable:$true] %s21_s19 }
   0x9   :  { %s295_s20 = scalar_lea.vmem %s22_s19, 1664  ;;  %p300_p1 = scmp.lt.s32.totalorder %s22_s19, %s22_s19 }
   0xa   :  { %p296_p0 = scmp.ne.s32.totalorder %s22_s19, %s295_s20  ;;  %p301_p2 = scmp.lt.s32.totalorder %s295_s20, %s295_s20 }
   0xc   :  { %p302_p3 = por %p301_p2, %p300_p1 }
   0xe   :  { %p303_p4 = pnand %p302_p3, %p296_p0 }
  0x10   :  { %306 = shalt.err (!%p303_p4)
}
  0x11   :  { %s357_s21 = smov 128   ;;  %s358_s22 = smov 8  }
  0x12   :  { %27 = dma.hbm_to_vmem [thread:$0]  %s430_s1, 1664, %s22_s19, [#allocation6], %s357_s21, %s357_s21, %s358_s22  }
  0x13   :  { %s359_s24 = smov [#allocation8]  }
  0x14   :  { %s33_s25 = sshll.u32 %s359_s24, 4  ;;  %s34_s25 = int_to_ptr.vmem [resolvable:$true] %s33_s25 }
  0x15   :  { %s315_s26 = scalar_lea.vmem %s34_s25, 2048  ;;  %p320_p6 = scmp.lt.s32.totalorder %s34_s25, %s34_s25 }
  0x16   :  { %p316_p5 = scmp.ne.s32.totalorder %s34_s25, %s315_s26  ;;  %p321_p7 = scmp.lt.s32.totalorder %s315_s26, %s315_s26 }
  0x18   :  { %p322_p8 = por %p321_p7, %p320_p6 }
  0x1a   :  { %p323_p9 = pnand %p322_p8, %p316_p5 }
  0x1c   :  { %326 = shalt.err (!%p323_p9)
}
  0x1d   :  { %39 = dma.hbm_to_vmem [thread:$0]  %s431_s2, 2048, %s34_s25, [#allocation9], %s357_s21, %s357_s21, %s358_s22  }
  0x1e   :  { %349 = dma.done.wait [#allocation6], 1664  }
  0x1f   :  { %350 = vsyncadd [#allocation6], 4294965632 }
  0x20   :  { %351 = dma.done.wait [#allocation9], 2048  }
  0x21   :  { %352 = vsyncadd [#allocation9], 4294965248  ;;  %v360_v0 = vmov 0.0   ;;  %vm361_vm0 = vmmov 0   ;;  %s48_s1 = sld [smem:[#allocation4]]  ;;  %v103_v1 = vld [vmem:[#allocation8 + $0x78] sm:$0xff] }
  0x22   :  { %232 = vmatprep.subr.mxu0 %v360_v0  ;;  %264 = vmatprep.mubr.msk.f32.mxu0 %vm361_vm0, %v360_v0  ;;  %s206_s29 = sld [smem:[#allocation4 + $0x1]]  ;;  %v102_v2 = vld [vmem:[#allocation8 + $0x70] sm:$0xff]  ;;  %v101_v3 = vld [vmem:[#allocation8 + $0x68] sm:$0xff]  ;;  %v100_v4 = vld [vmem:[#allocation8 + $0x60] sm:$0xff]  ;;  %s362_s19 = smov [#allocation10]  }
  0x23   :  { %s207_s30 = sld [smem:[#allocation4 + $0x2]]  ;;  %233 = vmatpush3.msra.mxu0 %v103_v1  ;;  %v99_v5 = vld [vmem:[#allocation8 + $0x58] sm:$0xff]  ;;  %v98_v12 = vld [vmem:[#allocation8 + $0x50] sm:$0xff]  ;;  %v97_v15 = vld [vmem:[#allocation8 + $0x48] sm:$0xff]  ;;  %s188_s20 = sshll.u32 %s362_s19, 4  ;;  %s189_s20 = int_to_ptr.vmem [resolvable:$true] %s188_s20 }
  0x24   :  { %s208_s5 = sld [smem:[#allocation4 + $0x3]]  ;;  %234 = vmatprep.subr.mxu0 %v360_v0  ;;  %v96_v16 = vld [vmem:[#allocation8 + $0x40] sm:$0xff]  ;;  %v95_v17 = vld [vmem:[#allocation8 + $0x38] sm:$0xff]  ;;  %v94_v18 = vld [vmem:[#allocation8 + $0x30] sm:$0xff]  ;;  %s327_s21 = scalar_lea.vmem %s189_s20, 128 }
  0x25   :  { %s209_s6 = sld [smem:[#allocation4 + $0x4]]  ;;  %235 = vmatpush3.msra.mxu0 %v102_v2  ;;  %v93_v21 = vld [vmem:[#allocation8 + $0x28] sm:$0xff]  ;;  %v92_v22 = vld [vmem:[#allocation8 + $0x20] sm:$0xff]  ;;  %v91_v23 = vld [vmem:[#allocation8 + $0x18] sm:$0xff]  ;;  %p328_p10 = scmp.ne.s32.totalorder %s189_s20, %s327_s21 }
  0x26   :  { %s399_s7 = sld [smem:[#allocation4 + $0x5]]  ;;  %236 = vmatprep.subr.mxu0 %v360_v0  ;;  %v90_v24 = vld [vmem:[#allocation8 + $0x10] sm:$0xff]  ;;  %v89_v25 = vld [vmem:[#allocation8 + $0x8] sm:$0xff]  ;;  %v88_v26 = vld [vmem:[#allocation8] sm:$0xff]  ;;  %p332_p11 = scmp.lt.s32.totalorder %s189_s20, %s189_s20 }
  0x27   :  { %s401_s2 = sld [smem:[#allocation4 + $0x6]]  ;;  %237 = vmatpush3.msra.mxu0 %v101_v3  ;;  %s49_s9 = scalar_lea.vmem [#allocation5], %s48_s1  ;;  %v214_v31 = vld [vmem:[%s432_s3] ss:$0 sm:$0xff] }
  0x28   :  { %s403_s8 = sld [smem:[#allocation4 + $0x7]]  ;;  %v50_v6 = vld [vmem:[%s49_s9] sm:$0x1]  ;;  %s53_s10 = scalar_lea.vmem [#allocation5], %s206_s29  ;;  %238 = vmatprep.subr.mxu0 %v360_v0 }
  0x29   :  { %v54_v7 = vld [vmem:[%s53_s10] sm:$0x1]  ;;  %51 = vst [vmem:[#allocation2] sm:$0x1] %v50_v6  ;;  %s57_s11 = scalar_lea.vmem [#allocation5], %s207_s30  ;;  %239 = vmatpush3.msra.mxu0 %v100_v4  ;;  %p333_p12 = scmp.lt.s32.totalorder %s327_s21, %s327_s21 }
  0x2a   :  { %55 = vst [vmem:[#allocation2 + $0x1] sm:$0x1] %v54_v7  ;;  %v58_v8 = vld [vmem:[%s57_s11] sm:$0x1]  ;;  %s61_s12 = scalar_lea.vmem [#allocation5], %s208_s5  ;;  %240 = vmatprep.subr.mxu0 %v360_v0 }
  0x2b   :  { %v62_v9 = vld [vmem:[%s61_s12] sm:$0x1]  ;;  %s65_s13 = scalar_lea.vmem [#allocation5], %s209_s6  ;;  %59 = vst [vmem:[#allocation2 + $0x2] sm:$0x1] %v58_v8  ;;  %241 = vmatpush3.msra.mxu0 %v99_v5  ;;  %p334_p13 = por %p333_p12, %p332_p11 }
  0x2c   :  { %v66_v10 = vld [vmem:[%s65_s13] sm:$0x1]  ;;  %63 = vst [vmem:[#allocation2 + $0x3] sm:$0x1] %v62_v9  ;;  %s69_s14 = scalar_lea.vmem [#allocation5], %s399_s7  ;;  %242 = vmatprep.subr.mxu0 %v360_v0 }
  0x2d   :  { %67 = vst [vmem:[#allocation2 + $0x4] sm:$0x1] %v66_v10  ;;  %v70_v11 = vld [vmem:[%s69_s14] sm:$0x1]  ;;  %s73_s15 = scalar_lea.vmem [#allocation5], %s401_s2  ;;  %243 = vmatpush3.msra.mxu0 %v98_v12  ;;  %p335_p0 = pnand %p334_p13, %p328_p10 }
  0x2e   :  { %71 = vst [vmem:[#allocation2 + $0x5] sm:$0x1] %v70_v11  ;;  %v74_v13 = vld [vmem:[%s73_s15] sm:$0x1]  ;;  %s77_s16 = scalar_lea.vmem [#allocation5], %s403_s8  ;;  %244 = vmatprep.subr.mxu0 %v360_v0 }
  0x2f   :  { %v78_v14 = vld [vmem:[%s77_s16] sm:$0x1]  ;;  %75 = vst [vmem:[#allocation2 + $0x6] sm:$0x1] %v74_v13  ;;  %245 = vmatpush3.msra.mxu0 %v97_v15 }
  0x30   :  { %79 = vst [vmem:[#allocation2 + $0x7] sm:$0x1] %v78_v14  ;;  %246 = vmatprep.subr.mxu0 %v360_v0 }
  0x31   :  { %247 = vmatpush3.msra.mxu0 %v96_v16 }
  0x32   :  { %248 = vmatprep.subr.mxu0 %v360_v0 }
  0x33   :  { %249 = vmatpush3.msra.mxu0 %v95_v17 }
  0x34   :  { %250 = vmatprep.subr.mxu0 %v360_v0 }
  0x35   :  { %251 = vmatpush3.msra.mxu0 %v94_v18 }
  0x36   :  { %252 = vmatprep.subr.mxu0 %v360_v0 }
  0x37   :  { %v80_v19 = vld [vmem:[#allocation2] sm:$0xff]  ;;  %253 = vmatpush3.msra.mxu0 %v93_v21 }
  0x38   :  { %v213_v20 = vmul.f32 -1.442695, %v80_v19  ;;  %254 = vmatprep.subr.mxu0 %v360_v0 }
  0x39   :  { %255 = vmatpush3.msra.mxu0 %v92_v22 }
  0x3a   :  { %275 = vpow2.f32 %v213_v20  ;;  %256 = vmatprep.subr.mxu0 %v360_v0 }
  0x3b   :  { %257 = vmatpush3.msra.mxu0 %v91_v23 }
  0x3c   :  { %258 = vmatprep.subr.mxu0 %v360_v0 }
  0x3d   :  { %259 = vmatpush3.msra.mxu0 %v90_v24 }
  0x3e   :  { %260 = vmatprep.subr.mxu0 %v360_v0 }
  0x3f   :  { %261 = vmatpush3.msra.mxu0 %v89_v25 }
  0x40   :  { %262 = vmatprep.subr.mxu0 %v360_v0 }
  0x41   :  { %263 = vmatpush3.msra.mxu0 %v88_v26 }
  0x47   :  { %v276_v27 = vpop.eup %275 }
  0x48   :  { %v84_v28 = vadd.f32 1.0, %v276_v27 }
  0x4a   :  { %277 = vrcp.f32 %v84_v28 }
  0x57   :  { %v278_v29 = vpop.eup %277 }
  0x58   :  { %v87_v30 = vmul.f32 %v278_v29, %v80_v19 }
  0x5a   :  { %265 = vmatmul.mubr.f32.vlgmr.msra.gmra.mxu0 %v87_v30 }
 0x11a   :  { %v177_v32 = vpop.f32.mrf.mxu0 }
 0x11b   :  { %v178_v33 = vadd.f32 %v214_v31, %v177_v32 }
 0x11c   :  { %v266_v34 = vpop.f32.mrf.mxu0 }
 0x11d   :  { %181 = vst [vmem:[#allocation10] sm:$0xff] %v178_v33 }
 0x11e   :  { %338 = shalt.err (!%p335_p0)
}
 0x11f   :  { %191 = dma.vmem_to_hbm [thread:$0]  %s189_s20, 128, %s433_s4, [#allocation7]  }
 0x120   :  { %353 = dma.done.wait [#allocation7], 128  }
 0x121   :  { %354 = vsyncadd [#allocation7], 4294967168 }
 0x122   :  { %195 = vsyncpa [#allocation6], 1 }
 0x123   :  { %196 = vsyncpa [#allocation9], 1 }
 0x124   :  { %197 = vsyncpa [#allocation7], 1 }

</bundles_post_ra>
